<compile_context>
chip_gen: v7x
topology: tpu7x:2x2x1
jax: 0.10.0
libtpu: 0.0.40
codegen_flags: <defaults>
</compile_context>

<pallas_src>
from functools import partial

import jax
import jax.numpy as jnp
from jax import lax
from jax.experimental import pallas as pl
from jax.experimental.pallas import tpu as pltpu

_LANE = 128
_SUBLANE = 8
_MIB = 1024 * 1024


def _round_up(x, m):
    return (x + m - 1) // m * m


def _cdiv(a, b):
    return -(-a // b)


def _tpu_limits():
    """Returns (vmem_limit_bytes for CompilerParams, #TensorCores heuristic)."""
    vmem = None
    try:
        info = pltpu.get_tpu_info()
        vmem = getattr(info, "vmem_capacity_bytes", None)
    except Exception:
        vmem = None
    if not vmem:
        vmem = 64 * _MIB                        # conservative default (v7x-sized)
    vmem = int(vmem)
    cores = 2 if vmem <= 64 * _MIB else 1       # v7x: 2 TCs / 64 MiB; v5e/v6e: 1 TC / 128 MiB
    limit = min(vmem * 3 // 4, 112 * _MIB)      # 48 MiB on v7x, 96 MiB on v5e/v6e
    return limit, cores


def _plan_row_tiles(ho, n_batch, per_row_bytes, fixed_bytes, vmem_limit, cores):
    """Balanced output-row tiling.

    Pick the largest tile that fits the VMEM budget, then rebalance so the
    zero padding on Ho is < n_t rows, and (on multi-core chips) ensure at
    least ~4 grid steps per TensorCore so BlockSpec double-buffering overlaps.
    """
    budget = int(vmem_limit * 0.8) - fixed_bytes
    t_max = max(1, min(ho, budget // max(1, per_row_bytes)))
    n_t = _cdiv(ho, t_max)
    min_steps = 4 * cores if cores > 1 else 1
    if n_batch * n_t < min_steps:
        n_t = min(ho, _cdiv(min_steps, n_batch))
    t_ho = _cdiv(ho, n_t)
    n_t = _cdiv(ho, t_ho)
    return t_ho, n_t


# ---------------------------------------------------------------------------
# Kernels
# ---------------------------------------------------------------------------

def _conv_ds_kernel(x_ref, halo_ref, w_ref, b_ref, o_ref):
    # x_ref:    (1, t_ho, 2, 2, Wq, Cp)  H-groups [t0, t0+t_ho); dims 2/3 = H/W parity
    # halo_ref: (1, 1,    2, 2, Wq, Cp)  H-group t0+t_ho (bottom halo row pair)
    # w_ref:    (3, 3, Cp, Cp)           (kh, kw, cin, cout), constant (resident)
    # b_ref:    (1, Cp)                  bias, f32
    # o_ref:    (1, t_ho, Wop, Cp)
    _, t_ho, wop, cp = o_ref.shape

    def tap(kh, kw):
        # input row 2*r + kh -> H-group r + hs, parity hp
        # input col 2*c + kw -> W-index c + ws, parity wp
        hp, hs = kh & 1, kh >> 1
        wp, ws = kw & 1, kw >> 1
        if hs == 0:
            rows = x_ref[0, :, hp, wp, pl.ds(ws, wop), :]
        elif t_ho == 1:
            rows = halo_ref[0, :, hp, wp, pl.ds(ws, wop), :]
        else:
            rows = jnp.concatenate(
                [x_ref[0, pl.ds(1, t_ho - 1), hp, wp, pl.ds(ws, wop), :],
                 halo_ref[0, :, hp, wp, pl.ds(ws, wop), :]],
                axis=0)
        return rows.reshape(t_ho * wop, cp)          # Wop % 8 == 0 -> layout-free

    acc = jnp.zeros((t_ho * wop, cp), jnp.float32) + b_ref[...]
    for kh in range(3):
        for kw in range(3):
            acc = acc + jnp.dot(tap(kh, kw), w_ref[kh, kw],
                                preferred_element_type=jnp.float32)
    o_ref[...] = acc.reshape(1, t_ho, wop, cp).astype(o_ref.dtype)


def _avgpool_ds_kernel(x_ref, o_ref):
    # x_ref: (1, t_ho, 2, 2, Wop, Cp)  dims 2/3 = H/W parity
    # o_ref: (1, t_ho, Wop, Cp)
    acc = x_ref[0, :, 0, 0].astype(jnp.float32)
    acc = acc + x_ref[0, :, 0, 1].astype(jnp.float32)
    acc = acc + x_ref[0, :, 1, 0].astype(jnp.float32)
    acc = acc + x_ref[0, :, 1, 1].astype(jnp.float32)
    o_ref[0] = (acc * 0.25).astype(o_ref.dtype)


# ---------------------------------------------------------------------------
# Wrappers
# ---------------------------------------------------------------------------

@partial(jax.jit, static_argnames=("with_conv", "compute_dtype", "out_dtype"))
def downsample_nhwc(x_nhwc, weight_oihw=None, bias=None, *, with_conv=True,
                    compute_dtype=jnp.bfloat16, out_dtype=None):
    """NHWC entry point (no NCHW<->NHWC transposes).  Returns (N, H//2, W//2, C)."""
    N, H, W, C = x_nhwc.shape
    out_dtype = x_nhwc.dtype if out_dtype is None else out_dtype
    Ho, Wo = H // 2, W // 2
    Cp = _round_up(C, _LANE)
    Wop = _round_up(Wo, _SUBLANE)
    in_isz = jnp.dtype(compute_dtype).itemsize
    out_isz = jnp.dtype(out_dtype).itemsize
    vmem_limit, cores = _tpu_limits()

    if with_conv:
        if weight_oihw is None or bias is None:
            raise ValueError("with_conv=True requires weight and bias")
        Wq = Wop + 1                                   # +1 column for the kw=2 tap
        per_row = (2 * 4 * Wq * Cp * in_isz            # input H-group, double-buffered
                   + 2 * Wop * Cp * out_isz            # output rows, double-buffered
                   + Wop * Cp * (4 + 2 * in_isz))      # f32 acc + live tap temporaries
        fixed = (2 * 9 * Cp * Cp * in_isz              # resident weights (2 buffers)
                 + 2 * 4 * Wq * Cp * in_isz            # halo block, double-buffered
                 + 2 * _MIB)                           # slack
        t_ho, n_t = _plan_row_tiles(Ho, N, per_row, fixed, vmem_limit, cores)
        Ho_pad = n_t * t_ho
        G = Ho_pad + 1                                 # H row-pair groups (incl. halo)

        # One fused layout pass: cast + zero-pad (covers F.pad (0,1,0,1)) and
        # split H/W into (pair, parity) with parity dims above the lane-dense
        # (Wq, Cp) minors -> all in-kernel taps are contiguous slices.
        xp = jnp.pad(x_nhwc.astype(compute_dtype),
                     ((0, 0), (0, 2 * G - H), (0, 2 * Wq - W), (0, Cp - C)))
        xq = xp.reshape(N, G, 2, Wq, 2, Cp).transpose(0, 1, 2, 4, 3, 5)

        wk = jnp.transpose(weight_oihw, (2, 3, 1, 0))          # (3,3,Cin,Cout)
        wk = jnp.pad(wk, ((0, 0), (0, 0), (0, Cp - C), (0, Cp - C)))
        wk = wk.astype(compute_dtype)
        bv = jnp.pad(bias, (0, Cp - C)).astype(jnp.float32).reshape(1, Cp)

        out = pl.pallas_call(
            _conv_ds_kernel,
            out_shape=jax.ShapeDtypeStruct((N, Ho_pad, Wop, Cp), out_dtype),
            grid=(N, n_t),
            in_specs=[
                pl.BlockSpec((1, t_ho, 2, 2, Wq, Cp),
                             lambda n, t: (n, t, 0, 0, 0, 0)),
                # halo: the row pair just below this tile, from the SAME array
                pl.BlockSpec((1, 1, 2, 2, Wq, Cp),
                             lambda n, t: (n, (t + 1) * t_ho, 0, 0, 0, 0)),
                pl.BlockSpec((3, 3, Cp, Cp), lambda n, t: (0, 0, 0, 0)),
                pl.BlockSpec((1, Cp), lambda n, t: (0, 0)),
            ],
            out_specs=pl.BlockSpec((1, t_ho, Wop, Cp), lambda n, t: (n, t, 0, 0)),
            compiler_params=pltpu.CompilerParams(
                dimension_semantics=("parallel", "parallel"),
                vmem_limit_bytes=vmem_limit),
        )(xq, xq, wk, bv)
    else:
        per_row = (2 * 4 * Wop * Cp * in_isz           # input H-group, double-buffered
                   + 2 * Wop * Cp * out_isz            # output rows, double-buffered
                   + Wop * Cp * (4 + in_isz))          # f32 acc + live phase
        fixed = 2 * _MIB
        t_ho, n_t = _plan_row_tiles(Ho, N, per_row, fixed, vmem_limit, cores)
        Ho_pad = n_t * t_ho

        # avg_pool2d floor semantics: an odd trailing row/column is dropped
        # (intentional).  Padding rows/cols/channels are zeros, sliced off below.
        xs = x_nhwc[:, :2 * Ho, :2 * Wo, :].astype(compute_dtype)
        xs = jnp.pad(xs, ((0, 0), (0, 2 * (Ho_pad - Ho)),
                          (0, 2 * (Wop - Wo)), (0, Cp - C)))
        xq = xs.reshape(N, Ho_pad, 2, Wop, 2, Cp).transpose(0, 1, 2, 4, 3, 5)

        out = pl.pallas_call(
            _avgpool_ds_kernel,
            out_shape=jax.ShapeDtypeStruct((N, Ho_pad, Wop, Cp), out_dtype),
            grid=(N, n_t),
            in_specs=[pl.BlockSpec((1, t_ho, 2, 2, Wop, Cp),
                                   lambda n, t: (n, t, 0, 0, 0, 0))],
            out_specs=pl.BlockSpec((1, t_ho, Wop, Cp), lambda n, t: (n, t, 0, 0)),
            compiler_params=pltpu.CompilerParams(
                dimension_semantics=("parallel", "parallel"),
                vmem_limit_bytes=vmem_limit),
        )(xq)

    return out[:, :Ho, :Wo, :C]


@partial(jax.jit, static_argnames=("with_conv", "compute_dtype", "out_dtype"))
def downsample(x_nchw, weight_oihw=None, bias=None, *, with_conv=True,
               compute_dtype=jnp.bfloat16, out_dtype=None):
    """PyTorch-layout entry point: (N,C,H,W) -> (N,C,H//2,W//2).

    The NCHW->NHWC transpose fuses (under jit) with the kernel's layout pass;
    NHWC callers should use downsample_nhwc directly and skip both transposes.
    """
    x = jnp.transpose(x_nchw, (0, 2, 3, 1))
    y = downsample_nhwc(x, weight_oihw, bias, with_conv=with_conv,
                        compute_dtype=compute_dtype, out_dtype=out_dtype)
    return jnp.transpose(y, (0, 3, 1, 2))


# ---------------------------------------------------------------------------
# References (pure JAX / f32)
# ---------------------------------------------------------------------------

def _ref_conv(x_nchw, w_oihw, b):
    xp = jnp.pad(x_nchw, ((0, 0), (0, 0), (0, 1), (0, 1)))
    y = lax.conv_general_dilated(
        xp, w_oihw, window_strides=(2, 2), padding="VALID",
        dimension_numbers=("NCHW", "OIHW", "NCHW"))
    return y + b.reshape(1, -1, 1, 1)


def _ref_avgpool(x_nchw):
    n, c, h, w = x_nchw.shape
    ho, wo = h // 2, w // 2
    return x_nchw[:, :, :2 * ho, :2 * wo].reshape(
        n, c, ho, 2, wo, 2).mean(axis=(3, 5))


if __name__ == "__main__":
    key = jax.random.PRNGKey(0)
    k_x, k_w, k_b = jax.random.split(key, 3)

    N, C, H, W = 2, 4, 16, 16
    x = jax.random.normal(k_x, (N, C, H, W), dtype=jnp.float32)
    weight = jax.random.normal(k_w, (C, C, 3, 3), dtype=jnp.float32) * 0.1
    bias = jax.random.normal(k_b, (C,), dtype=jnp.float32) * 0.1

    # The kernels compute with bf16 activations/weights and f32 accumulation;
    # compare against references built from bf16-representable inputs so
    # tolerances stay tight (only accumulation-order differences remain).
    xb = x.astype(jnp.bfloat16).astype(jnp.float32)
    wb = weight.astype(jnp.bfloat16).astype(jnp.float32)

    # with_conv=True path (3x3 / stride-2 conv with (0,1,0,1) zero pad)
    y_conv = jax.block_until_ready(downsample(x, weight, bias, with_conv=True))
    y_conv_ref = _ref_conv(xb, wb, bias)
    assert y_conv.shape == (N, C, H // 2, W // 2), y_conv.shape
    assert y_conv.dtype == x.dtype
    assert jnp.allclose(y_conv, y_conv_ref, atol=2e-3, rtol=2e-3), (
        float(jnp.max(jnp.abs(y_conv - y_conv_ref))))

    # with_conv=False path (avg_pool2d, kernel=2, stride=2)
    y_pool = jax.block_until_ready(downsample(x, with_conv=False))
    y_pool_ref = _ref_avgpool(xb)
    assert y_pool.shape == (N, C, H // 2, W // 2), y_pool.shape
    assert jnp.allclose(y_pool, y_pool_ref, atol=1e-3, rtol=1e-3), (
        float(jnp.max(jnp.abs(y_pool - y_pool_ref))))

    print("KERNEL_OK")
</pallas_src>

<mosaic_0001>
module attributes {stable_mosaic.version = 11 : i64} {
  func.func @_conv_ds_kernel(%arg0: i32, %arg1: i32, %arg2: memref<1x2x2x2x9x128xbf16, #tpu.memory_space<vmem>>, %arg3: memref<1x1x2x2x9x128xbf16, #tpu.memory_space<vmem>>, %arg4: memref<3x3x128x128xbf16, #tpu.memory_space<vmem>>, %arg5: memref<1x128xf32, #tpu.memory_space<vmem>>, %arg6: memref<1x2x8x128xf32, #tpu.memory_space<vmem>>) attributes {dimension_semantics = [#tpu.dimension_semantics<parallel>, #tpu.dimension_semantics<parallel>], iteration_bounds = array<i64: 2, 4>, scalar_prefetch = 0 : i64, scratch_operands = 0 : i64, tpu.core_type = #tpu.core_type<tc>, window_params = [{transform_indices = @transform_0, window_bounds = array<i64: 1, 2, 2, 2, 9, 128>}, {transform_indices = @transform_1, window_bounds = array<i64: 1, 1, 2, 2, 9, 128>}, {pipeline_mode = #tpu.pipeline_mode<synchronous>, transform_indices = @transform_2, window_bounds = array<i64: 3, 3, 128, 128>}, {pipeline_mode = #tpu.pipeline_mode<synchronous>, transform_indices = @transform_3, window_bounds = array<i64: 1, 128>}, {transform_indices = @transform_4, window_bounds = array<i64: 1, 2, 8, 128>}]} {
    %cst = arith.constant 0.000000e+00 : f32
    %0 = vector.broadcast %cst : f32 to vector<16x128xf32>
    %c0 = arith.constant 0 : index
    %c0_0 = arith.constant 0 : index
    %1 = vector.load %arg5[%c0, %c0_0] : memref<1x128xf32, #tpu.memory_space<vmem>>, vector<1x128xf32>
    %2 = vector.broadcast %1 : vector<1x128xf32> to vector<16x128xf32>
    %3 = arith.addf %0, %2 : vector<16x128xf32>
    %c0_1 = arith.constant 0 : index
    %c0_2 = arith.constant 0 : index
    %c0_3 = arith.constant 0 : index
    %c0_4 = arith.constant 0 : index
    %c0_5 = arith.constant 0 : index
    %c0_6 = arith.constant 0 : index
    %4 = vector.load %arg2[%c0_1, %c0_2, %c0_3, %c0_4, %c0_5, %c0_6] : memref<1x2x2x2x9x128xbf16, #tpu.memory_space<vmem>>, vector<1x2x1x1x8x128xbf16>
    %5 = vector.shape_cast %4 : vector<1x2x1x1x8x128xbf16> to vector<2x8x128xbf16>
    %6 = vector.shape_cast %5 : vector<2x8x128xbf16> to vector<16x128xbf16>
    %c0_7 = arith.constant 0 : index
    %c0_8 = arith.constant 0 : index
    %c0_9 = arith.constant 0 : index
    %c0_10 = arith.constant 0 : index
    %7 = vector.load %arg4[%c0_7, %c0_8, %c0_9, %c0_10] : memref<3x3x128x128xbf16, #tpu.memory_space<vmem>>, vector<1x1x128x128xbf16>
    %8 = vector.shape_cast %7 : vector<1x1x128x128xbf16> to vector<128x128xbf16>
    %cst_11 = arith.constant dense<0.000000e+00> : vector<16x128xf32>
    %9 = tpu.matmul %6, %8, %cst_11 {dimension_numbers = #tpu.dot_dimension_numbers<[1], [0], [0], [1], [0, 0, 1, 1], [], []>} : vector<16x128xbf16>, vector<128x128xbf16>, vector<16x128xf32> -> vector<16x128xf32>
    %10 = arith.addf %3, %9 : vector<16x128xf32>
    %c0_12 = arith.constant 0 : index
    %c0_13 = arith.constant 0 : index
    %c0_14 = arith.constant 0 : index
    %c1 = arith.constant 1 : index
    %c0_15 = arith.constant 0 : index
    %c0_16 = arith.constant 0 : index
    %11 = vector.load %arg2[%c0_12, %c0_13, %c0_14, %c1, %c0_15, %c0_16] : memref<1x2x2x2x9x128xbf16, #tpu.memory_space<vmem>>, vector<1x2x1x1x8x128xbf16>
    %12 = vector.shape_cast %11 : vector<1x2x1x1x8x128xbf16> to vector<2x8x128xbf16>
    %13 = vector.shape_cast %12 : vector<2x8x128xbf16> to vector<16x128xbf16>
    %c0_17 = arith.constant 0 : index
    %c1_18 = arith.constant 1 : index
    %c0_19 = arith.constant 0 : index
    %c0_20 = arith.constant 0 : index
    %14 = vector.load %arg4[%c0_17, %c1_18, %c0_19, %c0_20] : memref<3x3x128x128xbf16, #tpu.memory_space<vmem>>, vector<1x1x128x128xbf16>
    %15 = vector.shape_cast %14 : vector<1x1x128x128xbf16> to vector<128x128xbf16>
    %cst_21 = arith.constant dense<0.000000e+00> : vector<16x128xf32>
    %16 = tpu.matmul %13, %15, %cst_21 {dimension_numbers = #tpu.dot_dimension_numbers<[1], [0], [0], [1], [0, 0, 1, 1], [], []>} : vector<16x128xbf16>, vector<128x128xbf16>, vector<16x128xf32> -> vector<16x128xf32>
    %17 = arith.addf %10, %16 : vector<16x128xf32>
    %c0_22 = arith.constant 0 : index
    %c0_23 = arith.constant 0 : index
    %c0_24 = arith.constant 0 : index
    %c0_25 = arith.constant 0 : index
    %c1_26 = arith.constant 1 : index
    %c0_27 = arith.constant 0 : index
    %18 = vector.load %arg2[%c0_22, %c0_23, %c0_24, %c0_25, %c1_26, %c0_27] : memref<1x2x2x2x9x128xbf16, #tpu.memory_space<vmem>>, vector<1x2x1x1x8x128xbf16>
    %19 = vector.shape_cast %18 : vector<1x2x1x1x8x128xbf16> to vector<2x8x128xbf16>
    %20 = vector.shape_cast %19 : vector<2x8x128xbf16> to vector<16x128xbf16>
    %c0_28 = arith.constant 0 : index
    %c2 = arith.constant 2 : index
    %c0_29 = arith.constant 0 : index
    %c0_30 = arith.constant 0 : index
    %21 = vector.load %arg4[%c0_28, %c2, %c0_29, %c0_30] : memref<3x3x128x128xbf16, #tpu.memory_space<vmem>>, vector<1x1x128x128xbf16>
    %22 = vector.shape_cast %21 : vector<1x1x128x128xbf16> to vector<128x128xbf16>
    %cst_31 = arith.constant dense<0.000000e+00> : vector<16x128xf32>
    %23 = tpu.matmul %20, %22, %cst_31 {dimension_numbers = #tpu.dot_dimension_numbers<[1], [0], [0], [1], [0, 0, 1, 1], [], []>} : vector<16x128xbf16>, vector<128x128xbf16>, vector<16x128xf32> -> vector<16x128xf32>
    %24 = arith.addf %17, %23 : vector<16x128xf32>
    %c0_32 = arith.constant 0 : index
    %c0_33 = arith.constant 0 : index
    %c1_34 = arith.constant 1 : index
    %c0_35 = arith.constant 0 : index
    %c0_36 = arith.constant 0 : index
    %c0_37 = arith.constant 0 : index
    %25 = vector.load %arg2[%c0_32, %c0_33, %c1_34, %c0_35, %c0_36, %c0_37] : memref<1x2x2x2x9x128xbf16, #tpu.memory_space<vmem>>, vector<1x2x1x1x8x128xbf16>
    %26 = vector.shape_cast %25 : vector<1x2x1x1x8x128xbf16> to vector<2x8x128xbf16>
    %27 = vector.shape_cast %26 : vector<2x8x128xbf16> to vector<16x128xbf16>
    %c1_38 = arith.constant 1 : index
    %c0_39 = arith.constant 0 : index
    %c0_40 = arith.constant 0 : index
    %c0_41 = arith.constant 0 : index
    %28 = vector.load %arg4[%c1_38, %c0_39, %c0_40, %c0_41] : memref<3x3x128x128xbf16, #tpu.memory_space<vmem>>, vector<1x1x128x128xbf16>
    %29 = vector.shape_cast %28 : vector<1x1x128x128xbf16> to vector<128x128xbf16>
    %cst_42 = arith.constant dense<0.000000e+00> : vector<16x128xf32>
    %30 = tpu.matmul %27, %29, %cst_42 {dimension_numbers = #tpu.dot_dimension_numbers<[1], [0], [0], [1], [0, 0, 1, 1], [], []>} : vector<16x128xbf16>, vector<128x128xbf16>, vector<16x128xf32> -> vector<16x128xf32>
    %31 = arith.addf %24, %30 : vector<16x128xf32>
    %c0_43 = arith.constant 0 : index
    %c0_44 = arith.constant 0 : index
    %c1_45 = arith.constant 1 : index
    %c1_46 = arith.constant 1 : index
    %c0_47 = arith.constant 0 : index
    %c0_48 = arith.constant 0 : index
    %32 = vector.load %arg2[%c0_43, %c0_44, %c1_45, %c1_46, %c0_47, %c0_48] : memref<1x2x2x2x9x128xbf16, #tpu.memory_space<vmem>>, vector<1x2x1x1x8x128xbf16>
    %33 = vector.shape_cast %32 : vector<1x2x1x1x8x128xbf16> to vector<2x8x128xbf16>
    %34 = vector.shape_cast %33 : vector<2x8x128xbf16> to vector<16x128xbf16>
    %c1_49 = arith.constant 1 : index
    %c1_50 = arith.constant 1 : index
    %c0_51 = arith.constant 0 : index
    %c0_52 = arith.constant 0 : index
    %35 = vector.load %arg4[%c1_49, %c1_50, %c0_51, %c0_52] : memref<3x3x128x128xbf16, #tpu.memory_space<vmem>>, vector<1x1x128x128xbf16>
    %36 = vector.shape_cast %35 : vector<1x1x128x128xbf16> to vector<128x128xbf16>
    %cst_53 = arith.constant dense<0.000000e+00> : vector<16x128xf32>
    %37 = tpu.matmul %34, %36, %cst_53 {dimension_numbers = #tpu.dot_dimension_numbers<[1], [0], [0], [1], [0, 0, 1, 1], [], []>} : vector<16x128xbf16>, vector<128x128xbf16>, vector<16x128xf32> -> vector<16x128xf32>
    %38 = arith.addf %31, %37 : vector<16x128xf32>
    %c0_54 = arith.constant 0 : index
    %c0_55 = arith.constant 0 : index
    %c1_56 = arith.constant 1 : index
    %c0_57 = arith.constant 0 : index
    %c1_58 = arith.constant 1 : index
    %c0_59 = arith.constant 0 : index
    %39 = vector.load %arg2[%c0_54, %c0_55, %c1_56, %c0_57, %c1_58, %c0_59] : memref<1x2x2x2x9x128xbf16, #tpu.memory_space<vmem>>, vector<1x2x1x1x8x128xbf16>
    %40 = vector.shape_cast %39 : vector<1x2x1x1x8x128xbf16> to vector<2x8x128xbf16>
    %41 = vector.shape_cast %40 : vector<2x8x128xbf16> to vector<16x128xbf16>
    %c1_60 = arith.constant 1 : index
    %c2_61 = arith.constant 2 : index
    %c0_62 = arith.constant 0 : index
    %c0_63 = arith.constant 0 : index
    %42 = vector.load %arg4[%c1_60, %c2_61, %c0_62, %c0_63] : memref<3x3x128x128xbf16, #tpu.memory_space<vmem>>, vector<1x1x128x128xbf16>
    %43 = vector.shape_cast %42 : vector<1x1x128x128xbf16> to vector<128x128xbf16>
    %cst_64 = arith.constant dense<0.000000e+00> : vector<16x128xf32>
    %44 = tpu.matmul %41, %43, %cst_64 {dimension_numbers = #tpu.dot_dimension_numbers<[1], [0], [0], [1], [0, 0, 1, 1], [], []>} : vector<16x128xbf16>, vector<128x128xbf16>, vector<16x128xf32> -> vector<16x128xf32>
    %45 = arith.addf %38, %44 : vector<16x128xf32>
    %c0_65 = arith.constant 0 : index
    %c1_66 = arith.constant 1 : index
    %c0_67 = arith.constant 0 : index
    %c0_68 = arith.constant 0 : index
    %c0_69 = arith.constant 0 : index
    %c0_70 = arith.constant 0 : index
    %46 = vector.load %arg2[%c0_65, %c1_66, %c0_67, %c0_68, %c0_69, %c0_70] : memref<1x2x2x2x9x128xbf16, #tpu.memory_space<vmem>>, vector<1x1x1x1x8x128xbf16>
    %47 = vector.shape_cast %46 : vector<1x1x1x1x8x128xbf16> to vector<1x8x128xbf16>
    %c0_71 = arith.constant 0 : index
    %c0_72 = arith.constant 0 : index
    %c0_73 = arith.constant 0 : index
    %c0_74 = arith.constant 0 : index
    %c0_75 = arith.constant 0 : index
    %c0_76 = arith.constant 0 : index
    %48 = vector.load %arg3[%c0_71, %c0_72, %c0_73, %c0_74, %c0_75, %c0_76] : memref<1x1x2x2x9x128xbf16, #tpu.memory_space<vmem>>, vector<1x1x1x1x8x128xbf16>
    %49 = vector.shape_cast %48 : vector<1x1x1x1x8x128xbf16> to vector<1x8x128xbf16>
    %50 = tpu.concatenate %47, %49 in 0 : vector<1x8x128xbf16>, vector<1x8x128xbf16> -> vector<2x8x128xbf16>
    %51 = vector.shape_cast %50 : vector<2x8x128xbf16> to vector<16x128xbf16>
    %c2_77 = arith.constant 2 : index
    %c0_78 = arith.constant 0 : index
    %c0_79 = arith.constant 0 : index
    %c0_80 = arith.constant 0 : index
    %52 = vector.load %arg4[%c2_77, %c0_78, %c0_79, %c0_80] : memref<3x3x128x128xbf16, #tpu.memory_space<vmem>>, vector<1x1x128x128xbf16>
    %53 = vector.shape_cast %52 : vector<1x1x128x128xbf16> to vector<128x128xbf16>
    %cst_81 = arith.constant dense<0.000000e+00> : vector<16x128xf32>
    %54 = tpu.matmul %51, %53, %cst_81 {dimension_numbers = #tpu.dot_dimension_numbers<[1], [0], [0], [1], [0, 0, 1, 1], [], []>} : vector<16x128xbf16>, vector<128x128xbf16>, vector<16x128xf32> -> vector<16x128xf32>
    %55 = arith.addf %45, %54 : vector<16x128xf32>
    %c0_82 = arith.constant 0 : index
    %c1_83 = arith.constant 1 : index
    %c0_84 = arith.constant 0 : index
    %c1_85 = arith.constant 1 : index
    %c0_86 = arith.constant 0 : index
    %c0_87 = arith.constant 0 : index
    %56 = vector.load %arg2[%c0_82, %c1_83, %c0_84, %c1_85, %c0_86, %c0_87] : memref<1x2x2x2x9x128xbf16, #tpu.memory_space<vmem>>, vector<1x1x1x1x8x128xbf16>
    %57 = vector.shape_cast %56 : vector<1x1x1x1x8x128xbf16> to vector<1x8x128xbf16>
    %c0_88 = arith.constant 0 : index
    %c0_89 = arith.constant 0 : index
    %c0_90 = arith.constant 0 : index
    %c1_91 = arith.constant 1 : index
    %c0_92 = arith.constant 0 : index
    %c0_93 = arith.constant 0 : index
    %58 = vector.load %arg3[%c0_88, %c0_89, %c0_90, %c1_91, %c0_92, %c0_93] : memref<1x1x2x2x9x128xbf16, #tpu.memory_space<vmem>>, vector<1x1x1x1x8x128xbf16>
    %59 = vector.shape_cast %58 : vector<1x1x1x1x8x128xbf16> to vector<1x8x128xbf16>
    %60 = tpu.concatenate %57, %59 in 0 : vector<1x8x128xbf16>, vector<1x8x128xbf16> -> vector<2x8x128xbf16>
    %61 = vector.shape_cast %60 : vector<2x8x128xbf16> to vector<16x128xbf16>
    %c2_94 = arith.constant 2 : index
    %c1_95 = arith.constant 1 : index
    %c0_96 = arith.constant 0 : index
    %c0_97 = arith.constant 0 : index
    %62 = vector.load %arg4[%c2_94, %c1_95, %c0_96, %c0_97] : memref<3x3x128x128xbf16, #tpu.memory_space<vmem>>, vector<1x1x128x128xbf16>
    %63 = vector.shape_cast %62 : vector<1x1x128x128xbf16> to vector<128x128xbf16>
    %cst_98 = arith.constant dense<0.000000e+00> : vector<16x128xf32>
    %64 = tpu.matmul %61, %63, %cst_98 {dimension_numbers = #tpu.dot_dimension_numbers<[1], [0], [0], [1], [0, 0, 1, 1], [], []>} : vector<16x128xbf16>, vector<128x128xbf16>, vector<16x128xf32> -> vector<16x128xf32>
    %65 = arith.addf %55, %64 : vector<16x128xf32>
    %c0_99 = arith.constant 0 : index
    %c1_100 = arith.constant 1 : index
    %c0_101 = arith.constant 0 : index
    %c0_102 = arith.constant 0 : index
    %c1_103 = arith.constant 1 : index
    %c0_104 = arith.constant 0 : index
    %66 = vector.load %arg2[%c0_99, %c1_100, %c0_101, %c0_102, %c1_103, %c0_104] : memref<1x2x2x2x9x128xbf16, #tpu.memory_space<vmem>>, vector<1x1x1x1x8x128xbf16>
    %67 = vector.shape_cast %66 : vector<1x1x1x1x8x128xbf16> to vector<1x8x128xbf16>
    %c0_105 = arith.constant 0 : index
    %c0_106 = arith.constant 0 : index
    %c0_107 = arith.constant 0 : index
    %c0_108 = arith.constant 0 : index
    %c1_109 = arith.constant 1 : index
    %c0_110 = arith.constant 0 : index
    %68 = vector.load %arg3[%c0_105, %c0_106, %c0_107, %c0_108, %c1_109, %c0_110] : memref<1x1x2x2x9x128xbf16, #tpu.memory_space<vmem>>, vector<1x1x1x1x8x128xbf16>
    %69 = vector.shape_cast %68 : vector<1x1x1x1x8x128xbf16> to vector<1x8x128xbf16>
    %70 = tpu.concatenate %67, %69 in 0 : vector<1x8x128xbf16>, vector<1x8x128xbf16> -> vector<2x8x128xbf16>
    %71 = vector.shape_cast %70 : vector<2x8x128xbf16> to vector<16x128xbf16>
    %c2_111 = arith.constant 2 : index
    %c2_112 = arith.constant 2 : index
    %c0_113 = arith.constant 0 : index
    %c0_114 = arith.constant 0 : index
    %72 = vector.load %arg4[%c2_111, %c2_112, %c0_113, %c0_114] : memref<3x3x128x128xbf16, #tpu.memory_space<vmem>>, vector<1x1x128x128xbf16>
    %73 = vector.shape_cast %72 : vector<1x1x128x128xbf16> to vector<128x128xbf16>
    %cst_115 = arith.constant dense<0.000000e+00> : vector<16x128xf32>
    %74 = tpu.matmul %71, %73, %cst_115 {dimension_numbers = #tpu.dot_dimension_numbers<[1], [0], [0], [1], [0, 0, 1, 1], [], []>} : vector<16x128xbf16>, vector<128x128xbf16>, vector<16x128xf32> -> vector<16x128xf32>
    %75 = arith.addf %65, %74 : vector<16x128xf32>
    %76 = vector.shape_cast %75 : vector<16x128xf32> to vector<1x2x8x128xf32>
    %c0_116 = arith.constant 0 : index
    %c0_117 = arith.constant 0 : index
    %c0_118 = arith.constant 0 : index
    %c0_119 = arith.constant 0 : index
    %77 = vector.load %arg6[%c0_116, %c0_117, %c0_118, %c0_119] : memref<1x2x8x128xf32, #tpu.memory_space<vmem>>, vector<1x2x8x128xf32>
    tpu.vector_store %arg6[%c0_116, %c0_117, %c0_118, %c0_119], %76 {strides = array<i32>} : memref<1x2x8x128xf32, #tpu.memory_space<vmem>>, vector<1x2x8x128xf32>,
    return
  }
  func.func @transform_0(%arg0: i32, %arg1: i32) -> (i32, i32, i32, i32, i32, i32) {
    %c0_i32 = arith.constant 0 : i32
    %c0_i32_0 = arith.constant 0 : i32
    %c0_i32_1 = arith.constant 0 : i32
    %c0_i32_2 = arith.constant 0 : i32
    %c0_i32_3 = arith.constant 0 : i32
    return %arg0, %arg1, %c0_i32, %c0_i32_0, %c0_i32_1, %c0_i32_2 : i32, i32, i32, i32, i32, i32
  }
  func.func @transform_1(%arg0: i32, %arg1: i32) -> (i32, i32, i32, i32, i32, i32) {
    %c1_i32 = arith.constant 1 : i32
    %0 = arith.addi %arg1, %c1_i32 : i32
    %c2_i32 = arith.constant 2 : i32
    %1 = arith.muli %0, %c2_i32 : i32
    %c0_i32 = arith.constant 0 : i32
    %c0_i32_0 = arith.constant 0 : i32
    %c0_i32_1 = arith.constant 0 : i32
    %c0_i32_2 = arith.constant 0 : i32
    %c0_i32_3 = arith.constant 0 : i32
    return %arg0, %1, %c0_i32, %c0_i32_0, %c0_i32_1, %c0_i32_2 : i32, i32, i32, i32, i32, i32
  }
  func.func @transform_2(%arg0: i32, %arg1: i32) -> (i32, i32, i32, i32) {
    %c0_i32 = arith.constant 0 : i32
    %c0_i32_0 = arith.constant 0 : i32
    %c0_i32_1 = arith.constant 0 : i32
    %c0_i32_2 = arith.constant 0 : i32
    %c0_i32_3 = arith.constant 0 : i32
    return %c0_i32, %c0_i32_0, %c0_i32_1, %c0_i32_2 : i32, i32, i32, i32
  }
  func.func @transform_3(%arg0: i32, %arg1: i32) -> (i32, i32) {
    %c0_i32 = arith.constant 0 : i32
    %c0_i32_0 = arith.constant 0 : i32
    %c0_i32_1 = arith.constant 0 : i32
    return %c0_i32, %c0_i32_0 : i32, i32
  }
  func.func @transform_4(%arg0: i32, %arg1: i32) -> (i32, i32, i32, i32) {
    %c0_i32 = arith.constant 0 : i32
    %c0_i32_0 = arith.constant 0 : i32
    %c0_i32_1 = arith.constant 0 : i32
    return %arg0, %arg1, %c0_i32, %c0_i32_0 : i32, i32, i32, i32
  }
}

</mosaic_0001>

<bundles_post_ra>
// kernel: downsample_nhwc.1
= control target key start
LH: loop header
LB: loop body
LE: loop exit
PB: predicated region body
PF: predicated region fallthrough
CT: control target
= control target key end

     0   :  { %s2308_s15 = smov 0   ;;  %s2310_s16 = smov 0   ;;  %s2737_s0 = inlined_call_operand.vmem [shape: bf16[2,9,2,2,9,128], index: 0, kind: input, shape index: {}, may-alias: {0,1}]   ;;  %s2738_s1 = inlined_call_operand.vmem [shape: bf16[2,9,2,2,9,128], index: 1, kind: input, shape index: {}, may-alias: {0,1}]   ;;  %s2739_s2 = inlined_call_operand.vmem [shape: bf16[3,3,128,128], index: 2, kind: input, shape index: {}]   ;;  %s2740_s3 = inlined_call_operand.vmem [shape: f32[1,128], index: 3, kind: input, shape index: {}]   ;;  %s2741_s4 = inlined_call_operand.vmem [shape: f32[2,8,8,128], index: 4, kind: output, shape index: {}]  }
   0x1   :  { %s2312_s17 = smov 0   ;;  %s2314_s18 = smov 0  }
   0x2   :  { %s2316_s19 = smov 0  }
   0x3 LB: > { %s23_s20 = sadd.s32 1, %s2271_s17  ;;  %s26_s21 = sadd.s32 1, %s2275_s18  ;;  %s2279_s19 = sphi %s2316_s19, %s14_s19   ;;  %s2275_s18 = sphi %s2314_s18, %s2747_s18   ;;  %s2271_s17 = sphi %s2312_s17, %s2746_s17   ;;  %s2267_s16 = sphi %s2310_s16, %s2745_s16   ;;  %s2263_s15 = sphi %s2308_s15, %s2744_s15  }
   0x4   : > { %p24_p0 = scmp.ge.s32.totalorder %s23_s20, 4  ;;  %p1590_p1 = scmp.ge.s32.totalorder %s2279_s19, 1 }
   0x5   : > { %p222_p2 = scmp.lt.s32.totalorder %s2279_s19, 9 }
   0x6   : > { %s2749_s20 = smov (%p24_p0, %s23_s20), 0  ;;  %s2751_s21 = smov (!%p24_p0, %s26_s21), %s2275_s18 }
   0x7   : > { %p223_p3 = pnand %p1590_p1, %p222_p2  ;;  %p28_p4 = scmp.ge.s32.totalorder %s2751_s21, 2 }
   0x8   : > { %v2169_v0 = vld [vmem:[%s2739_s2] sm:$0xff] (!%p223_p3)   ;;  %v2281_v1 = vmov (!%p223_p3), 0.0   ;;  %v2171_v3 = vld [vmem:[%s2739_s2 + $0x8] sm:$0xff] (!%p223_p3)   ;;  %vm2282_vm0 = vmmov (!%p223_p3), 0   ;;  %s2353_s28 = sshll.u32 (!%p223_p3), %s2263_s15, 1  ;;  %p283_p5 = scmp.lt.s32.totalorder (!%p223_p3), %s2267_s16, 1 }
   0x9   : > { %s2753_s21 = smov (%p28_p4, %s2751_s21), 0  ;;  %226 = sbr.rel (%p223_p3) target bundleno = 388 (0x184), region = 36 }
   0xa   : > { %1914 = vmatprep.subr.bf16.mxu1 (!%p223_p3), %v2281_v1  ;;  %1994 = vmatprep.subr.bf16.mxu0 (!%p223_p3), %v2281_v1  ;;  %v2170_v2 = vld [vmem:[%s2739_s2 + $0x100] sm:$0xff] (!%p223_p3)   ;;  %v2172_v4 = vld [vmem:[%s2739_s2 + $0x108] sm:$0xff] (!%p223_p3)   ;;  %p285_p6 = scmp.lt.s32.totalorder (!%p223_p3), %s2353_s28, 8  ;;  %v2173_v5 = vld [vmem:[%s2739_s2 + $0x10] sm:$0xff] (!%p223_p3)   ;;  %s1832_s29 = sadd.s32 (!%p223_p3), 2, %s2353_s28 }
   0xb   : > { %1915 = vmatpush3.bf16.msra.mxu1 (!%p223_p3), %v2169_v0  ;;  %1930 = vmatprep.mubr.msk.bf16.mxu1 (!%p223_p3), %vm2282_vm0, %v2281_v1  ;;  %v2174_v6 = vld [vmem:[%s2739_s2 + $0x110] sm:$0xff] (!%p223_p3)   ;;  %v2175_v7 = vld [vmem:[%s2739_s2 + $0x18] sm:$0xff] (!%p223_p3)   ;;  %v2177_v9 = vld [vmem:[%s2739_s2 + $0x20] sm:$0xff] (!%p223_p3)   ;;  %p304_p7 = scmp.lt.s32.totalorder (!%p223_p3), %s1832_s29, 8  ;;  %vm568_vm1 = vsmask.f32 (!%p223_p3), 3328 }
   0xc   : > { %1995 = vmatpush3.bf16.msra.mxu0 (!%p223_p3), %v2170_v2  ;;  %1916 = vmatprep.subr.bf16.mxu1 (!%p223_p3), %v2281_v1  ;;  %v2176_v8 = vld [vmem:[%s2739_s2 + $0x118] sm:$0xff] (!%p223_p3)   ;;  %v2178_v10 = vld [vmem:[%s2739_s2 + $0x120] sm:$0xff] (!%p223_p3)   ;;  %v2179_v11 = vld [vmem:[%s2739_s2 + $0x28] sm:$0xff] (!%p223_p3)   ;;  %vm569_vm2 = vsmask.f32 (!%p223_p3), 7440  ;;  %p316_p8 = scmp.lt.s32.totalorder (!%p223_p3), %s2353_s28, 7 }
   0xd   : > { %1996 = vmatprep.subr.bf16.mxu0 (!%p223_p3), %v2281_v1  ;;  %2010 = vmatprep.mubr.msk.bf16.mxu0 (!%p223_p3), %vm2282_vm0, %v2281_v1  ;;  %v2180_v12 = vld [vmem:[%s2739_s2 + $0x128] sm:$0xff] (!%p223_p3)   ;;  %v2181_v13 = vld [vmem:[%s2739_s2 + $0x30] sm:$0xff] (!%p223_p3)   ;;  %v2183_v15 = vld [vmem:[%s2739_s2 + $0x38] sm:$0xff] (!%p223_p3)  }
   0xe   : > { %v2182_v14 = vld [vmem:[%s2739_s2 + $0x130] sm:$0xff] (!%p223_p3)   ;;  %v2184_v17 = vld [vmem:[%s2739_s2 + $0x138] sm:$0xff] (!%p223_p3)   ;;  %v2185_v22 = vld [vmem:[%s2739_s2 + $0x40] sm:$0xff] (!%p223_p3)  }
   0xf   : > { %1917 = vmatpush3.bf16.msra.mxu1 (!%p223_p3), %v2171_v3  ;;  %v2186_v24 = vld [vmem:[%s2739_s2 + $0x140] sm:$0xff] (!%p223_p3)   ;;  %v2187_v25 = vld [vmem:[%s2739_s2 + $0x48] sm:$0xff] (!%p223_p3)   ;;  %v2189_v27 = vld [vmem:[%s2739_s2 + $0x50] sm:$0xff] (!%p223_p3)  }
  0x10   : > { %1997 = vmatpush3.bf16.msra.mxu0 %v2172_v4  ;;  %1918 = vmatprep.subr.bf16.mxu1 %v2281_v1  ;;  %s2755_s16 = smov (!%p283_p5, %s2267_s16), 1  ;;  %v2188_v26 = vld [vmem:[%s2739_s2 + $0x148] sm:$0xff]   ;;  %v2190_v28 = vld [vmem:[%s2739_s2 + $0x150] sm:$0xff]   ;;  %v2191_v30 = vld [vmem:[%s2739_s2 + $0x58] sm:$0xff]   ;;  %s2757_s29 = smov (!%p304_p7, %s1832_s29), 8 }
  0x11   : > { %1998 = vmatprep.subr.bf16.mxu0 %v2281_v1  ;;  %s286_s9 = scalar_select %p285_p6, %s2353_s28, 8  ;;  %v2192_v32 = vld [vmem:[%s2739_s2 + $0x158] sm:$0xff]   ;;  %v2193_v37 = vld [vmem:[%s2739_s2 + $0x60] sm:$0xff]   ;;  %v2195_v45 = vld [vmem:[%s2739_s2 + $0x68] sm:$0xff]  }
  0x12   : > { %s2126_s14 = smul.u32 72, %s2755_s16  ;;  %v2194_v38 = vld [vmem:[%s2739_s2 + $0x160] sm:$0xff]   ;;  %v2196_v46 = vld [vmem:[%s2739_s2 + $0x168] sm:$0xff]   ;;  %v2197_v51 = vld [vmem:[%s2739_s2 + $0x70] sm:$0xff]   ;;  %s1595_s24 = sshll.u32 %s2757_s29, 3 }
  0x13   : > { %1919 = vmatpush3.bf16.msra.mxu1 %v2173_v5  ;;  %s1592_s15 = sshll.u32 %s286_s9, 3  ;;  %v2198_v52 = vld [vmem:[%s2739_s2 + $0x170] sm:$0xff]   ;;  %vm2493_vm3 = vmor %vm568_vm1, %vm569_vm2  ;;  %v2199_v58 = vld [vmem:[%s2739_s2 + $0x78] sm:$0xff]   ;;  %s2759_s28 = smov (!%p316_p8, %s2353_s28), 7 }
  0x14   : > { %1999 = vmatpush3.bf16.msra.mxu0 %v2174_v6  ;;  %1920 = vmatprep.subr.bf16.mxu1 %v2281_v1  ;;  %s289_s26 = sadd.s32 %s2126_s14, %s1592_s15  ;;  %v2200_v59 = vld [vmem:[%s2739_s2 + $0x178] sm:$0xff]   ;;  %v2201_v2 = vld [vmem:[%s2739_s2 + $0x80] sm:$0xff]   ;;  %s308_s27 = sadd.s32 %s2126_s14, %s1595_s24  ;;  %v2203_v5 = vld [vmem:[%s2739_s2 + $0x88] sm:$0xff]  }
  0x15   : > { %2000 = vmatprep.subr.bf16.mxu0 %v2281_v1  ;;  %s1593_s30 = sshll.u32 %s289_s26, 2  ;;  %v2202_v4 = vld [vmem:[%s2739_s2 + $0x180] sm:$0xff]   ;;  %s1596_s5 = sshll.u32 %s308_s27, 2  ;;  %v2204_v6 = vld [vmem:[%s2739_s2 + $0x188] sm:$0xff]  }
  0x16   : > { %s2406_s9 = scalar_lea.vmem %s2737_s0, %s1593_s30  ;;  %s2537_s15 = scalar_lea.vmem %s2738_s1, %s1596_s5  ;;  %v2219_v57 = vld [vmem:[%s2739_s2 + $0xc8] sm:$0xff]  }
  0x17   : > { %1921 = vmatpush3.bf16.msra.mxu1 %v2175_v7  ;;  %v332_v16 = vld [vmem:[%s2406_s9] sm:$0xf]  ;;  %v1689_v19 = vld [vmem:[%s2406_s9 + $0x18] sm:$0xf]  ;;  %v1716_v29 = vld [vmem:[%s2406_s9 + $0x10] sm:$0xf] }
  0x18   : > { %2001 = vmatpush3.bf16.msra.mxu0 %v2176_v8  ;;  %1922 = vmatprep.subr.bf16.mxu1 %v2281_v1  ;;  %v333_v18 = vld [vmem:[%s2406_s9 + $0x20] sm:$0xf]  ;;  %v1690_v20 = vld [vmem:[%s2406_s9 + $0x38] sm:$0xf]  ;;  %v1718_v31 = vld [vmem:[%s2406_s9 + $0x30] sm:$0xf] }
  0x19   : > { %2002 = vmatprep.subr.bf16.mxu0 %v2281_v1  ;;  %v1601_v21 = vcombine.low %v332_v16, %v333_v18  ;;  %v1707_v23 = vcombine.low %v1689_v19, %v1690_v20  ;;  %v950_v33 = vshrl.u32 %v1716_v29, 16  ;;  %v953_v34 = vshll.u32 %v1716_v29, 16  ;;  %v1717_v39 = vld [vmem:[%s2406_s9 + $0x14] sm:$0x1]  ;;  %v1610_v60 = vld [vmem:[%s2406_s9 + $0x8] sm:$0xf] }
  0x1a   : > { %v964_v35 = vshrl.u32 %v1718_v31, 16  ;;  %v967_v36 = vshll.u32 %v1718_v31, 16  ;;  %v1719_v44 = vld [vmem:[%s2406_s9 + $0x34] sm:$0x1]  ;;  %v959_v48 = vshll.u32 %v1717_v39, 16  ;;  %v2207_v16 = vld [vmem:[%s2739_s2 + $0x98] sm:$0xff]  }
  0x1b   : > { %1923 = vmatpush3.bf16.msra.mxu1 %v2177_v9  ;;  %v952_v40 = vrot.slane %v950_v33, 4  ;;  %v955_v41 = vrot.slane %v953_v34, 5  ;;  %v973_v50 = vshll.u32 %v1719_v44, 16  ;;  %v1611_v61 = vld [vmem:[%s2406_s9 + $0x28] sm:$0xf]  ;;  %v2205_v7 = vld [vmem:[%s2739_s2 + $0x90] sm:$0xff]  }
  0x1c   : > { %2003 = vmatpush3.bf16.msra.mxu0 %v2178_v10  ;;  %1924 = vmatprep.subr.bf16.mxu1 %v2281_v1  ;;  %v966_v42 = vrot.slane %v964_v35, 4  ;;  %v969_v43 = vrot.slane %v967_v36, 5  ;;  %v961_v54 = vrot.slane %v959_v48, 5  ;;  %v1628_v0 = vcombine.low %v1610_v60, %v1611_v61  ;;  %v2206_v8 = vld [vmem:[%s2739_s2 + $0x190] sm:$0xff]   ;;  %v1326_v9 = vld [vmem:[%s2537_s15] sm:$0xf] }
  0x1d   : > { %2004 = vmatprep.subr.bf16.mxu0 %v2281_v1  ;;  %v956_v47 = vor.u32 %v955_v41, %v952_v40  ;;  %v975_v56 = vrot.slane %v973_v50, 5  ;;  %v564_v10 = vld [vmem:[%s2406_s9] sm:$0xf]  ;;  %v2208_v19 = vld [vmem:[%s2739_s2 + $0x198] sm:$0xff]   ;;  %v567_v29 = vld [vmem:[%s2406_s9 + $0x24] sm:$0x1] }
  0x1e   : > { %v970_v49 = vor.u32 %v969_v43, %v966_v42  ;;  %v2209_v20 = vld [vmem:[%s2739_s2 + $0xa0] sm:$0xff]   ;;  %v2211_v31 = vld [vmem:[%s2739_s2 + $0xa8] sm:$0xff]   ;;  %v595_v36 = vshll.u32 %v567_v29, 16  ;;  %v2213_v48 = vld [vmem:[%s2739_s2 + $0xb0] sm:$0xff]   ;;  %s1598_s22 = sshll.u32 %s2755_s16, 3 }
  0x1f   : > { %1925 = vmatpush3.bf16.msra.mxu1 %v2179_v11  ;;  %v957_v53 = vrot.slane %v956_v47, 4  ;;  %v566_v11 = vld [vmem:[%s2406_s9 + $0x20] sm:$0xf]  ;;  %v2212_v33 = vld [vmem:[%s2739_s2 + $0x1a8] sm:$0xff]   ;;  %v1327_v39 = vld [vmem:[%s2537_s15 + $0x4] sm:$0x1]  ;;  %s319_s23 = sadd.s32 %s1598_s22, %s2759_s28 }
  0x20   : > { %2005 = vmatpush3.bf16.msra.mxu0 %v2180_v12  ;;  %1926 = vmatprep.subr.bf16.mxu1 %v2281_v1  ;;  %v971_v55 = vrot.slane %v970_v49, 4  ;;  %v1343_v12 = vshrl.u32 %v1326_v9, 16  ;;  %v589_v18 = vshll.u32 %v566_v11, 16  ;;  %v1352_v44 = vshll.u32 %v1327_v39, 16  ;;  %v2235_v29 = vld [vmem:[%s2739_s2 + $0x210] sm:$0xff]   ;;  %s1599_s26 = sshll.u32 %s319_s23, 3 }
  0x21   : > { %2006 = vmatprep.subr.bf16.mxu0 %v2281_v1  ;;  %v962_v62 = vsel %vm2493_vm3, %v957_v53, %v961_v54  ;;  %v2214_v53 = vld [vmem:[%s2739_s2 + $0x1b0] sm:$0xff]   ;;  %v1600_v39 = vld [vmem:[%s2740_s3] ss:$0 sm:$0xff] }
  0x22   : > { %v976_v63 = vsel %vm2493_vm3, %v971_v55, %v975_v56 }
  0x23   : > { %1927 = vmatpush3.bf16.msra.mxu1 %v2181_v13  ;;  %v1736_v3 = vcombine.low %v962_v62, %v976_v63  ;;  %v1346_v13 = vshll.u32 %v1326_v9, 16  ;;  %v2216_v62 = vld [vmem:[%s2739_s2 + $0x1b8] sm:$0xff]   ;;  %v1745_v63 = vld [vmem:[%s2406_s9 + $0x20] sm:$0xf]  ;;  %v2221_v9 = vld [vmem:[%s2739_s2 + $0xd0] sm:$0xff]  }
  0x24   : > { %2007 = vmatpush3.bf16.msra.mxu0 %v2182_v14  ;;  %1928 = vmatprep.subr.bf16.mxu1 %v2281_v1  ;;  %v572_v14 = vshrl.u32 %v564_v10, 16 }
  0x25   : > { %2008 = vmatprep.subr.bf16.mxu0 %v2281_v1 }
  0x27   : > { %1929 = vmatpush3.bf16.msra.mxu1 %v2183_v15  ;;  %v575_v15 = vshll.u32 %v564_v10, 16  ;;  %v2222_v10 = vld [vmem:[%s2739_s2 + $0x1d0] sm:$0xff]  }
  0x28   : > { %2009 = vmatpush3.bf16.msra.mxu0 %v2184_v17  ;;  %1934 = vmatprep.subr.bf16.mxu1 %v2281_v1  ;;  %v586_v17 = vshrl.u32 %v566_v11, 16  ;;  %v2223_v11 = vld [vmem:[%s2739_s2 + $0xd8] sm:$0xff]  }
  0x29   : > { %2014 = vmatprep.subr.bf16.mxu0 %v2281_v1 }
  0x2a   : > { %1931 = vmatmul.mubr.bf16.vlgmr.msra.gmra.mrb[0].mxu1 %v1601_v21  ;;  %v565_v21 = vld [vmem:[%s2406_s9 + $0x4] sm:$0x1] }
  0x2b   : > { %1935 = vmatpush3.bf16.msra.mxu1 %v2185_v22  ;;  %2011 = vmatmul.mubr.bf16.vlgmr.msra.gmra.mrb[0].mxu0 %v1707_v23  ;;  %v1345_v22 = vrot.slane %v1343_v12, 4  ;;  %v1348_v23 = vrot.slane %v1346_v13, 5  ;;  %v2224_v12 = vld [vmem:[%s2739_s2 + $0x1d8] sm:$0xff]   ;;  %v2225_v13 = vld [vmem:[%s2739_s2 + $0xe0] sm:$0xff]  }
  0x2c   : > { %2015 = vmatpush3.bf16.msra.mxu0 %v2186_v24  ;;  %1936 = vmatprep.subr.bf16.mxu1 %v2281_v1  ;;  %v2210_v24 = vld [vmem:[%s2739_s2 + $0x1a0] sm:$0xff]  }
  0x2d   : > { %2016 = vmatprep.subr.bf16.mxu0 %v2281_v1  ;;  %1950 = vmatprep.mubr.msk.bf16.mxu1 %vm2282_vm0, %v2281_v1 }
  0x2e   : > { %2030 = vmatprep.mubr.msk.bf16.mxu0 %vm2282_vm0, %v2281_v1 }
  0x2f   : > { %1937 = vmatpush3.bf16.msra.mxu1 %v2187_v25  ;;  %v574_v25 = vrot.slane %v572_v14, 4  ;;  %v2226_v14 = vld [vmem:[%s2739_s2 + $0x1e0] sm:$0xff]  }
  0x30   : > { %2017 = vmatpush3.bf16.msra.mxu0 %v2188_v26  ;;  %1938 = vmatprep.subr.bf16.mxu1 %v2281_v1  ;;  %v577_v26 = vrot.slane %v575_v15, 5  ;;  %v2227_v15 = vld [vmem:[%s2739_s2 + $0xe8] sm:$0xff]  }
  0x31   : > { %2018 = vmatprep.subr.bf16.mxu0 %v2281_v1 }
  0x32   : > { %v578_v34 = vor.u32 %v577_v26, %v574_v25 }
  0x33   : > { %1939 = vmatpush3.bf16.msra.mxu1 %v2189_v27  ;;  %v588_v27 = vrot.slane %v586_v17, 4  ;;  %v2229_v17 = vld [vmem:[%s2739_s2 + $0xf0] sm:$0xff]  }
  0x34   : > { %2019 = vmatpush3.bf16.msra.mxu0 %v2190_v28  ;;  %1940 = vmatprep.subr.bf16.mxu1 %v2281_v1  ;;  %v591_v28 = vrot.slane %v589_v18, 5  ;;  %v579_v49 = vrot.slane %v578_v34, 4  ;;  %v2230_v18 = vld [vmem:[%s2739_s2 + $0x1f0] sm:$0xff]   ;;  %v2240_v34 = vld [vmem:[%s2739_s2 + $0x238] sm:$0xff]  }
  0x35   : > { %2020 = vmatprep.subr.bf16.mxu0 %v2281_v1 }
  0x36   : > { %v592_v35 = vor.u32 %v591_v28, %v588_v27  ;;  %v2233_v27 = vld [vmem:[%s2739_s2 + $0x200] sm:$0xff]   ;;  %v2234_v28 = vld [vmem:[%s2739_s2 + $0x208] sm:$0xff]  }
  0x37   : > { %1941 = vmatpush3.bf16.msra.mxu1 %v2191_v30  ;;  %v1349_v30 = vor.u32 %v1348_v23, %v1345_v22  ;;  %v2232_v22 = vld [vmem:[%s2739_s2 + $0x1f8] sm:$0xff]   ;;  %v1771_v23 = vld [vmem:[%s2406_s9 + $0x28] sm:$0xf] }
  0x38   : > { %2021 = vmatpush3.bf16.msra.mxu0 %v2192_v32  ;;  %1942 = vmatprep.subr.bf16.mxu1 %v2281_v1  ;;  %v581_v32 = vshll.u32 %v565_v21, 16  ;;  %v593_v50 = vrot.slane %v592_v35, 4  ;;  %v1663_v21 = vld [vmem:[%s2406_s9 + $0x30] sm:$0xf] }
  0x39   : > { %2022 = vmatprep.subr.bf16.mxu0 %v2281_v1  ;;  %v1350_v43 = vrot.slane %v1349_v30, 4  ;;  %v2236_v30 = vld [vmem:[%s2739_s2 + $0x218] sm:$0xff]  }
  0x3b   : > { %1943 = vmatpush3.bf16.msra.mxu1 %v2193_v37  ;;  %v1798_v37 = vld [vmem:[%s2406_s9 + $0x20] sm:$0xf] }
  0x3c   : > { %2023 = vmatpush3.bf16.msra.mxu0 %v2194_v38  ;;  %1944 = vmatprep.subr.bf16.mxu1 %v2281_v1  ;;  %v1799_v38 = vld [vmem:[%s2406_s9 + $0x24] sm:$0x1]  ;;  %v1329_v40 = vshrl.u32 %v1798_v37, 16  ;;  %v1332_v41 = vshll.u32 %v1798_v37, 16 }
  0x3d   : > { %2024 = vmatprep.subr.bf16.mxu0 %v2281_v1  ;;  %v1338_v42 = vshll.u32 %v1799_v38, 16 }
  0x3e   : > { %v1334_v47 = vrot.slane %v1332_v41, 5 }
  0x3f   : > { %1945 = vmatpush3.bf16.msra.mxu1 %v2195_v45  ;;  %v583_v45 = vrot.slane %v581_v32, 5  ;;  %v1340_v55 = vrot.slane %v1338_v42, 5  ;;  %v2238_v32 = vld [vmem:[%s2739_s2 + $0x228] sm:$0xff]  }
  0x40   : > { %2025 = vmatpush3.bf16.msra.mxu0 %v2196_v46  ;;  %1946 = vmatprep.subr.bf16.mxu1 %v2281_v1  ;;  %v1331_v46 = vrot.slane %v1329_v40, 4 }
  0x41   : > { %2026 = vmatprep.subr.bf16.mxu0 %v2281_v1  ;;  %v584_v60 = vsel %vm2493_vm3, %v579_v49, %v583_v45 }
  0x42   : > { %v1335_v54 = vor.u32 %v1334_v47, %v1331_v46 }
  0x43   : > { %1947 = vmatpush3.bf16.msra.mxu1 %v2197_v51  ;;  %v597_v51 = vrot.slane %v595_v36, 5 }
  0x44   : > { %2027 = vmatpush3.bf16.msra.mxu0 %v2198_v52  ;;  %1948 = vmatprep.subr.bf16.mxu1 %v2281_v1  ;;  %v1354_v52 = vrot.slane %v1352_v44, 5 }
  0x45   : > { %2028 = vmatprep.subr.bf16.mxu0 %v2281_v1  ;;  %v598_v61 = vsel %vm2493_vm3, %v593_v50, %v597_v51 }
  0x46   : > { %v1355_v56 = vsel %vm2493_vm3, %v1350_v43, %v1354_v52 }
  0x47   : > { %1949 = vmatpush3.bf16.msra.mxu1 %v2199_v58  ;;  %v1336_v58 = vrot.slane %v1335_v54, 4 }
  0x48   : > { %2029 = vmatpush3.bf16.msra.mxu0 %v2200_v59  ;;  %1954 = vmatprep.subr.bf16.mxu1 %v2281_v1  ;;  %v2215_v59 = vld [vmem:[%s2739_s2 + $0xb8] sm:$0xff]  }
  0x49   : > { %2034 = vmatprep.subr.bf16.mxu0 %v2281_v1 }
  0x4a   : > { %1951 = vmatmul.mubr.bf16.vlgmr.msra.gmra.mrb[0].mxu1 %v1628_v0  ;;  %v1091_v0 = vld [vmem:[%s2537_s15] sm:$0xf] }
  0x4b   : > { %1955 = vmatpush3.bf16.msra.mxu1 %v2201_v2  ;;  %2031 = vmatmul.mubr.bf16.vlgmr.msra.gmra.mrb[0].mxu0 %v1736_v3  ;;  %v1341_v2 = vsel %vm2493_vm3, %v1336_v58, %v1340_v55 }
  0x4c   : > { %2035 = vmatpush3.bf16.msra.mxu0 %v2202_v4  ;;  %1956 = vmatprep.subr.bf16.mxu1 %v2281_v1  ;;  %v2604_v3 = vcombine.low %v1341_v2, %v1355_v56  ;;  %v1653_v4 = vcombine.low %v584_v60, %v598_v61 }
  0x4d   : > { %2036 = vmatprep.subr.bf16.mxu0 %v2281_v1  ;;  %1970 = vmatprep.mubr.msk.bf16.mxu1 %vm2282_vm0, %v2281_v1 }
  0x4e   : > { %2050 = vmatprep.mubr.msk.bf16.mxu0 %vm2282_vm0, %v2281_v1 }
  0x4f   : > { %1957 = vmatpush3.bf16.msra.mxu1 %v2203_v5  ;;  %v2217_v5 = vld [vmem:[%s2739_s2 + $0xc0] sm:$0xff]  }
  0x50   : > { %2037 = vmatpush3.bf16.msra.mxu0 %v2204_v6  ;;  %1958 = vmatprep.subr.bf16.mxu1 %v2281_v1  ;;  %v1762_v6 = vcombine.low %v1745_v63, %v1091_v0 }
  0x51   : > { %2038 = vmatprep.subr.bf16.mxu0 %v2281_v1 }
  0x53   : > { %1959 = vmatpush3.bf16.msra.mxu1 %v2205_v7  ;;  %v2218_v7 = vld [vmem:[%s2739_s2 + $0x1c0] sm:$0xff]  }
  0x54   : > { %2039 = vmatpush3.bf16.msra.mxu0 %v2206_v8  ;;  %1960 = vmatprep.subr.bf16.mxu1 %v2281_v1  ;;  %v2220_v8 = vld [vmem:[%s2739_s2 + $0x1c8] sm:$0xff]  }
  0x55   : > { %2040 = vmatprep.subr.bf16.mxu0 %v2281_v1 }
  0x57   : > { %1961 = vmatpush3.bf16.msra.mxu1 %v2207_v16  ;;  %v2228_v16 = vld [vmem:[%s2739_s2 + $0x1e8] sm:$0xff]  }
  0x58   : > { %2041 = vmatpush3.bf16.msra.mxu0 %v2208_v19  ;;  %1962 = vmatprep.subr.bf16.mxu1 %v2281_v1  ;;  %v2231_v19 = vld [vmem:[%s2739_s2 + $0xf8] sm:$0xff]  }
  0x59   : > { %2042 = vmatprep.subr.bf16.mxu0 %v2281_v1 }
  0x5b   : > { %1963 = vmatpush3.bf16.msra.mxu1 %v2209_v20  ;;  %v1662_v20 = vld [vmem:[%s2406_s9 + $0x10] sm:$0xf]  ;;  %s321_s9 = scalar_lea.vmem %s2741_s4, %s1599_s26 }
  0x5c   : > { %2043 = vmatpush3.bf16.msra.mxu0 %v2210_v24  ;;  %1964 = vmatprep.subr.bf16.mxu1 %v2281_v1  ;;  %v1772_v24 = vld [vmem:[%s2537_s15 + $0x8] sm:$0xf]  ;;  %v1680_v25 = vcombine.low %v1662_v20, %v1663_v21 }
  0x5d   : > { %2044 = vmatprep.subr.bf16.mxu0 %v2281_v1  ;;  %v1789_v26 = vcombine.low %v1771_v23, %v1772_v24 }
  0x5f   : > { %1965 = vmatpush3.bf16.msra.mxu1 %v2211_v31  ;;  %v2237_v31 = vld [vmem:[%s2739_s2 + $0x220] sm:$0xff]  }
  0x60   : > { %2045 = vmatpush3.bf16.msra.mxu0 %v2212_v33  ;;  %1966 = vmatprep.subr.bf16.mxu1 %v2281_v1  ;;  %v2239_v33 = vld [vmem:[%s2739_s2 + $0x230] sm:$0xff]  }
  0x61   : > { %2046 = vmatprep.subr.bf16.mxu0 %v2281_v1 }
  0x63   : > { %1967 = vmatpush3.bf16.msra.mxu1 %v2213_v48 }
  0x64   : > { %2047 = vmatpush3.bf16.msra.mxu0 %v2214_v53  ;;  %1968 = vmatprep.subr.bf16.mxu1 %v2281_v1 }
  0x65   : > { %2048 = vmatprep.subr.bf16.mxu0 %v2281_v1 }
  0x67   : > { %1969 = vmatpush3.bf16.msra.mxu1 %v2215_v59 }
  0x68   : > { %2049 = vmatpush3.bf16.msra.mxu0 %v2216_v62  ;;  %1974 = vmatprep.subr.bf16.mxu1 %v2281_v1 }
  0x69   : > { %2054 = vmatprep.subr.bf16.mxu0 %v2281_v1 }
  0x6a   : > { %1971 = vmatmul.mubr.bf16.vlgmr.msra.gmra.mrb[0].mxu1 %v1653_v4 }
  0x6b   : > { %1975 = vmatpush3.bf16.msra.mxu1 %v2217_v5  ;;  %2051 = vmatmul.mubr.bf16.vlgmr.msra.gmra.mrb[0].mxu0 %v1762_v6 }
  0x6c   : > { %2055 = vmatpush3.bf16.msra.mxu0 %v2218_v7  ;;  %1976 = vmatprep.subr.bf16.mxu1 %v2281_v1 }
  0x6d   : > { %2056 = vmatprep.subr.bf16.mxu0 %v2281_v1  ;;  %1990 = vmatprep.mubr.msk.bf16.mxu1 %vm2282_vm0, %v2281_v1 }
  0x6e   : > { %2070 = vmatprep.mubr.msk.bf16.mxu0 %vm2282_vm0, %v2281_v1 }
  0x6f   : > { %1977 = vmatpush3.bf16.msra.mxu1 %v2219_v57 }
  0x70   : > { %2057 = vmatpush3.bf16.msra.mxu0 %v2220_v8  ;;  %1978 = vmatprep.subr.bf16.mxu1 %v2281_v1 }
  0x71   : > { %2058 = vmatprep.subr.bf16.mxu0 %v2281_v1 }
  0x73   : > { %1979 = vmatpush3.bf16.msra.mxu1 %v2221_v9 }
  0x74   : > { %2059 = vmatpush3.bf16.msra.mxu0 %v2222_v10  ;;  %1980 = vmatprep.subr.bf16.mxu1 %v2281_v1 }
  0x75   : > { %2060 = vmatprep.subr.bf16.mxu0 %v2281_v1 }
  0x77   : > { %1981 = vmatpush3.bf16.msra.mxu1 %v2223_v11 }
  0x78   : > { %2061 = vmatpush3.bf16.msra.mxu0 %v2224_v12  ;;  %1982 = vmatprep.subr.bf16.mxu1 %v2281_v1 }
  0x79   : > { %2062 = vmatprep.subr.bf16.mxu0 %v2281_v1 }
  0x7b   : > { %1983 = vmatpush3.bf16.msra.mxu1 %v2225_v13 }
  0x7c   : > { %2063 = vmatpush3.bf16.msra.mxu0 %v2226_v14  ;;  %1984 = vmatprep.subr.bf16.mxu1 %v2281_v1 }
  0x7d   : > { %2064 = vmatprep.subr.bf16.mxu0 %v2281_v1 }
  0x7f   : > { %1985 = vmatpush3.bf16.msra.mxu1 %v2227_v15 }
  0x80   : > { %2065 = vmatpush3.bf16.msra.mxu0 %v2228_v16  ;;  %1986 = vmatprep.subr.bf16.mxu1 %v2281_v1 }
  0x81   : > { %2066 = vmatprep.subr.bf16.mxu0 %v2281_v1 }
  0x83   : > { %1987 = vmatpush3.bf16.msra.mxu1 %v2229_v17 }
  0x84   : > { %2067 = vmatpush3.bf16.msra.mxu0 %v2230_v18  ;;  %1988 = vmatprep.subr.bf16.mxu1 %v2281_v1 }
  0x85   : > { %2068 = vmatprep.subr.bf16.mxu0 %v2281_v1 }
  0x87   : > { %1989 = vmatpush3.bf16.msra.mxu1 %v2231_v19 }
  0x88   : > { %2069 = vmatpush3.bf16.msra.mxu0 %v2232_v22 }
  0x89   : > { %2074 = vmatprep.subr.bf16.mxu0 %v2281_v1 }
  0x8a   : > { %1991 = vmatmul.mubr.bf16.vlgmr.msra.gmra.mrb[0].mxu1 %v1680_v25 }
  0x8b   : > { %2071 = vmatmul.mubr.bf16.vlgmr.msra.gmra.mrb[0].mxu0 %v1789_v26 }
  0x8c   : > { %2075 = vmatpush3.bf16.msra.mxu0 %v2233_v27  ;;  %2090 = vmatprep.mubr.msk.bf16.mxu0 %vm2282_vm0, %v2281_v1 }
  0x8d   : > { %2076 = vmatprep.subr.bf16.mxu0 %v2281_v1 }
  0x90   : > { %2077 = vmatpush3.bf16.msra.mxu0 %v2234_v28 }
  0x91   : > { %2078 = vmatprep.subr.bf16.mxu0 %v2281_v1 }
  0x94   : > { %2079 = vmatpush3.bf16.msra.mxu0 %v2235_v29 }
  0x95   : > { %2080 = vmatprep.subr.bf16.mxu0 %v2281_v1 }
  0x98   : > { %2081 = vmatpush3.bf16.msra.mxu0 %v2236_v30 }
  0x99   : > { %2082 = vmatprep.subr.bf16.mxu0 %v2281_v1 }
  0x9c   : > { %2083 = vmatpush3.bf16.msra.mxu0 %v2237_v31 }
  0x9d   : > { %2084 = vmatprep.subr.bf16.mxu0 %v2281_v1 }
  0xa0   : > { %2085 = vmatpush3.bf16.msra.mxu0 %v2238_v32 }
  0xa1   : > { %2086 = vmatprep.subr.bf16.mxu0 %v2281_v1 }
  0xa4   : > { %2087 = vmatpush3.bf16.msra.mxu0 %v2239_v33 }
  0xa5   : > { %2088 = vmatprep.subr.bf16.mxu0 %v2281_v1 }
  0xa8   : > { %2089 = vmatpush3.bf16.msra.mxu0 %v2240_v34 }
  0xab   : > { %2091 = vmatmul.mubr.bf16.vlgmr.msra.gmra.mrb[0].mxu0 %v2604_v3 }
 0x15d   : > { %v819_v35 = vpop.f32.mrb[0].mxu1 }
 0x15e   : > { %v1992_v36 = vpop.f32.mrb[1].mxu1  ;;  %v2094_v40 = vadd.f32 %v1600_v39, %v819_v35 }
 0x15f   : > { %v822_v37 = vpop.f32.mrb[2].mxu1 }
 0x160   : > { %v1993_v38 = vpop.f32.mrb[3].mxu1  ;;  %v2096_v41 = vadd.f32 %v1600_v39, %v822_v37 }
 0x17e   : > { %v1459_v1 = vpop.f32.mrb[0].mxu0 }
 0x17f   : > { %v2095_v42 = vadd.f32 %v2094_v40, %v1459_v1  ;;  %v2092_v43 = vpop.f32.mrb[1].mxu0 }
 0x180   : > { %v1462_v44 = vpop.f32.mrb[2].mxu0 }
 0x181   : > { %1468 = vst [vmem:[%s321_s9] sm:$0xff] %v2095_v42  ;;  %v2097_v45 = vadd.f32 %v2096_v41, %v1462_v44  ;;  %v2093_v46 = vpop.f32.mrb[3].mxu0 }
 0x183   : > { %1469 = vst [vmem:[%s321_s9 + $0x8] sm:$0xff] %v2097_v45 }
 0x184 PF: > { %s14_s19 = sadd.s32 1, %s2279_s19   ;;  %s2744_s15 = smov %s2271_s17 }
 0x185   : > { %p11_p9 = scmp.ge.s32.totalorder %s14_s19, 10   ;;  %s2745_s16 = smov %s2275_s18 }
 0x186   : > { %s2746_s17 = smov %s2749_s20  ;;  %s2747_s18 = smov %s2753_s21 }
 0x187   :  { %13 = sbr.rel (!%p11_p9) target bundleno = 3 (0x3), region = 83 }

</bundles_post_ra>
